<compile_context>
chip_gen: v7x
topology: tpu7x:2x2x1
jax: 0.10.0
libtpu: 0.0.40
codegen_flags: <defaults>
</compile_context>

<pallas_src>
import jax
import jax.numpy as jnp
from jax.experimental import pallas as pl
from jax.experimental.pallas import tpu as pltpu


def _round_up(x, m):
    return ((x + m - 1) // m) * m


def _critic_kernel(sa_ref, w1_ref, b1_ref, w2h_ref, w2a_ref, b2_ref,
                   w3_ref, b3_ref, o_ref):
    sa = sa_ref[...]                    # (Bt, S+1) f32: [s | a]
    a = sa[:, -1:]                      # action column, kept f32 for VPU math

    # fc1 + relu on the MXU. Operands cast to the stored weight dtype (bf16 by
    # default -> bf16 x bf16 -> f32 acc; a no-op for f32 weights). The appended
    # zero weight row makes the action column inert in this matmul.
    h1 = jnp.dot(sa.astype(w1_ref.dtype), w1_ref[...],
                 preferred_element_type=jnp.float32)
    h1 = jnp.maximum(h1 + b1_ref[...], 0.0)

    # fc2 + relu with the concat folded: cat([h1, a]) @ W2^T == h1 @ W2h + a * w2a.
    h2 = jnp.dot(h1.astype(w2h_ref.dtype), w2h_ref[...],
                 preferred_element_type=jnp.float32)
    h2 = jnp.maximum(h2 + a * w2a_ref[...] + b2_ref[...], 0.0)

    # fc3 (H2 -> 1): VPU multiply + XLU lane reduce; write a lane-dense Q row.
    q = jnp.sum(h2 * w3_ref[...], axis=-1)          # (Bt,)
    o_ref[...] = q.reshape(1, -1) + b3_ref[...]     # (1, Bt)


def prepare_params(params, weight_dtype=jnp.bfloat16):
    """One-time weight repack (call OUTSIDE the hot loop and reuse the result):
      - transpose PyTorch (out, in) layouts to (in, out) for the MXU,
      - append a zero row to w1^T so the folded [s | a] input works unchanged,
      - split fc2 into the h1 block and the single action column,
      - zero-pad hidden dims to multiples of 128 (lane-dense, no masked tiles;
        zeros are mathematically inert through dot + bias(0) + relu),
      - store the two MXU weights in `weight_dtype` (bf16 default: full MXU
        rate, half the weight DMA); biases / action column / fc3 row stay f32.
    """
    w1, b1, w2, b2, w3, b3 = (params["w1"], params["b1"], params["w2"],
                              params["b2"], params["w3"], params["b3"])
    hidden1, state_dim = w1.shape
    hidden2 = w2.shape[0]
    # The concat fold is only valid for action_size == 1 (as in the module).
    assert w2.shape[1] == hidden1 + 1, "concat fold requires action_size == 1"
    assert w3.shape == (1, hidden2)

    h1p = _round_up(hidden1, 128)
    h2p = _round_up(hidden2, 128)

    def pad2(x, rows, cols):
        return jnp.pad(x, ((0, rows - x.shape[0]), (0, cols - x.shape[1])))

    w1_t = pad2(w1.T, state_dim + 1, h1p).astype(weight_dtype)       # (S+1, H1p)
    w2h_t = pad2(w2[:, :hidden1].T, h1p, h2p).astype(weight_dtype)   # (H1p, H2p)
    w2a = pad2(w2[:, hidden1:].T, 1, h2p).astype(jnp.float32)        # (1, H2p)
    w3row = pad2(w3, 1, h2p).astype(jnp.float32)                     # (1, H2p)
    b1_r = pad2(b1.reshape(1, -1), 1, h1p).astype(jnp.float32)       # (1, H1p)
    b2_r = pad2(b2.reshape(1, -1), 1, h2p).astype(jnp.float32)       # (1, H2p)
    b3_r = b3.reshape(1, 1).astype(jnp.float32)                      # (1, 1)

    return dict(w1_t=w1_t, b1=b1_r, w2h_t=w2h_t, w2a=w2a, b2=b2_r,
                w3row=w3row, b3=b3_r,
                state_dim=state_dim, h1p=h1p, h2p=h2p)


def _pick_block_b(B):
    """Batch tile: big tiles amortize the ~0.35 us fixed per-grid-step cost and
    fill the 256-wide v6e/v7x MXU; for B > 512 keep >=2 grid steps so the
    "parallel" batch axis can shard across both v7x TensorCores."""
    if B <= 512:
        return _round_up(B, 8)                          # single grid step
    return min(1024, _round_up(pl.cdiv(B, 2), 256))     # >=2 steps, MXU-sized


def ddpg_critic_forward(s, a, prep):
    """s: (B, state_dim), a: (B,) or (B, 1) -> Q values shaped like torch's
    `out.squeeze()`. `prep` is the output of prepare_params (weights repacked)."""
    B = s.shape[0]
    state_dim = prep["state_dim"]
    h1p, h2p = prep["h1p"], prep["h2p"]
    assert s.shape == (B, state_dim)

    # Fold a as one extra trailing column of s: a single batch-tiled input stream
    # (one fewer per-step DMA descriptor / double-buffered narrow tile).
    sa = jnp.concatenate(
        [s.astype(jnp.float32), a.reshape(B, 1).astype(jnp.float32)], axis=1)

    block_b = _pick_block_b(B)
    b_pad = _round_up(B, block_b)
    if b_pad != B:
        sa = jnp.pad(sa, ((0, b_pad - B), (0, 0)))

    row = lambda i: (i, 0)      # batch-tiled input
    col = lambda i: (0, i)      # lane-dense batch-tiled output row
    const = lambda i: (0, 0)    # weights: same block every step -> stay in VMEM

    out = pl.pallas_call(
        _critic_kernel,
        out_shape=jax.ShapeDtypeStruct((1, b_pad), jnp.float32),
        grid=(b_pad // block_b,),
        in_specs=[
            pl.BlockSpec((block_b, state_dim + 1), row),   # [s | a]
            pl.BlockSpec((state_dim + 1, h1p), const),     # w1^T (+ zero action row)
            pl.BlockSpec((1, h1p), const),                 # b1
            pl.BlockSpec((h1p, h2p), const),               # w2h^T
            pl.BlockSpec((1, h2p), const),                 # w2a row
            pl.BlockSpec((1, h2p), const),                 # b2
            pl.BlockSpec((1, h2p), const),                 # w3 row
            pl.BlockSpec((1, 1), const),                   # b3
        ],
        out_specs=pl.BlockSpec((1, block_b), col),
        compiler_params=pltpu.CompilerParams(
            dimension_semantics=("parallel",)),
    )(sa, prep["w1_t"], prep["b1"], prep["w2h_t"], prep["w2a"],
      prep["b2"], prep["w3row"], prep["b3"])

    return out[0, :B].squeeze()   # matches torch `out.squeeze()`


def init_params(key, state_dim, hidden1=400, hidden2=300, action_size=1):
    """Deterministic init mimicking nn.Linear default (uniform +/- 1/sqrt(fan_in))."""
    ks = jax.random.split(key, 6)

    def linear(kw, kb, fan_in, fan_out):
        bound = 1.0 / jnp.sqrt(jnp.float32(fan_in))
        w = jax.random.uniform(kw, (fan_out, fan_in), jnp.float32, -bound, bound)
        b = jax.random.uniform(kb, (fan_out,), jnp.float32, -bound, bound)
        return w, b

    w1, b1 = linear(ks[0], ks[1], state_dim, hidden1)
    w2, b2 = linear(ks[2], ks[3], hidden1 + action_size, hidden2)
    w3, b3 = linear(ks[4], ks[5], hidden2, 1)
    return {"w1": w1, "b1": b1, "w2": w2, "b2": b2, "w3": w3, "b3": b3}


def _reference_forward(s, a, params):
    """Plain-JAX replica of the PyTorch forward for verification."""
    a2 = a.reshape(-1, 1)
    h1 = jnp.maximum(s @ params["w1"].T + params["b1"], 0.0)
    h2 = jnp.maximum(jnp.concatenate([h1, a2], axis=1) @ params["w2"].T
                     + params["b2"], 0.0)
    return (h2 @ params["w3"].T + params["b3"]).squeeze()


if __name__ == "__main__":
    key = jax.random.PRNGKey(0)
    k_p, k_s, k_a, k_s2, k_a2 = jax.random.split(key, 5)

    state_dim, hidden1, hidden2 = 16, 400, 300
    params = init_params(k_p, state_dim, hidden1, hidden2)

    # Small batch (single grid step).
    B = 8
    s = jax.random.normal(k_s, (B, state_dim), jnp.float32)
    a = jax.random.normal(k_a, (B,), jnp.float32)
    ref = _reference_forward(s, a, params)

    # f32-weight path: bit-faithful to the reference math.
    prep_f32 = prepare_params(params, jnp.float32)
    out_f32 = jax.block_until_ready(ddpg_critic_forward(s, a, prep_f32))
    assert out_f32.shape == (B,), out_f32.shape
    assert jnp.allclose(out_f32, ref, atol=1e-4, rtol=1e-4), (out_f32, ref)

    # Default path: bf16 matmul operands (full MXU rate, half the weight DMA).
    prep_bf16 = prepare_params(params)
    out_bf16 = jax.block_until_ready(ddpg_critic_forward(s, a, prep_bf16))
    assert out_bf16.shape == (B,), out_bf16.shape
    assert jnp.allclose(out_bf16, ref, atol=5e-2, rtol=5e-2), (out_bf16, ref)

    # Larger, non-aligned batch: exercises batch padding, the >=2-step grid, and
    # the lane-dense (1, block_b) output index_map.
    B2 = 1037
    s2 = jax.random.normal(k_s2, (B2, state_dim), jnp.float32)
    a2 = jax.random.normal(k_a2, (B2,), jnp.float32)
    ref2 = _reference_forward(s2, a2, params)
    out2 = jax.block_until_ready(ddpg_critic_forward(s2, a2, prep_bf16))
    assert out2.shape == (B2,), out2.shape
    assert jnp.allclose(out2, ref2, atol=5e-2, rtol=5e-2), \
        float(jnp.max(jnp.abs(out2 - ref2)))

    print("KERNEL_OK")
</pallas_src>

<mosaic_0001>
module attributes {stable_mosaic.version = 11 : i64} {
  func.func @_critic_kernel(%arg0: i32, %arg1: memref<8x17xf32, #tpu.memory_space<vmem>>, %arg2: memref<17x512xf32, #tpu.memory_space<vmem>>, %arg3: memref<1x512xf32, #tpu.memory_space<vmem>>, %arg4: memref<512x384xf32, #tpu.memory_space<vmem>>, %arg5: memref<1x384xf32, #tpu.memory_space<vmem>>, %arg6: memref<1x384xf32, #tpu.memory_space<vmem>>, %arg7: memref<1x384xf32, #tpu.memory_space<vmem>>, %arg8: memref<1x1xf32, #tpu.memory_space<vmem>>, %arg9: memref<1x8xf32, #tpu.memory_space<vmem>>) attributes {dimension_semantics = [#tpu.dimension_semantics<parallel>], iteration_bounds = array<i64: 1>, scalar_prefetch = 0 : i64, scratch_operands = 0 : i64, tpu.core_type = #tpu.core_type<tc>, window_params = [{transform_indices = @transform_0, window_bounds = array<i64: 8, 17>}, {pipeline_mode = #tpu.pipeline_mode<synchronous>, transform_indices = @transform_1, window_bounds = array<i64: 17, 512>}, {pipeline_mode = #tpu.pipeline_mode<synchronous>, transform_indices = @transform_2, window_bounds = array<i64: 1, 512>}, {pipeline_mode = #tpu.pipeline_mode<synchronous>, transform_indices = @transform_3, window_bounds = array<i64: 512, 384>}, {pipeline_mode = #tpu.pipeline_mode<synchronous>, transform_indices = @transform_4, window_bounds = array<i64: 1, 384>}, {pipeline_mode = #tpu.pipeline_mode<synchronous>, transform_indices = @transform_5, window_bounds = array<i64: 1, 384>}, {pipeline_mode = #tpu.pipeline_mode<synchronous>, transform_indices = @transform_6, window_bounds = array<i64: 1, 384>}, {pipeline_mode = #tpu.pipeline_mode<synchronous>, transform_indices = @transform_7, window_bounds = array<i64: 1, 1>}, {transform_indices = @transform_8, window_bounds = array<i64: 1, 8>}]} {
    %c0 = arith.constant 0 : index
    %c0_0 = arith.constant 0 : index
    %0 = vector.load %arg1[%c0, %c0_0] : memref<8x17xf32, #tpu.memory_space<vmem>>, vector<8x17xf32>
    %1 = vector.extract_strided_slice %0 {offsets = [0, 16], sizes = [8, 1], strides = [1, 1]} : vector<8x17xf32> to vector<8x1xf32>
    %c0_1 = arith.constant 0 : index
    %c0_2 = arith.constant 0 : index
    %2 = vector.load %arg2[%c0_1, %c0_2] : memref<17x512xf32, #tpu.memory_space<vmem>>, vector<17x512xf32>
    %cst = arith.constant dense<0.000000e+00> : vector<8x512xf32>
    %3 = tpu.matmul %0, %2, %cst {dimension_numbers = #tpu.dot_dimension_numbers<[1], [0], [0], [1], [0, 0, 1, 1], [], []>} : vector<8x17xf32>, vector<17x512xf32>, vector<8x512xf32> -> vector<8x512xf32>
    %c0_3 = arith.constant 0 : index
    %c0_4 = arith.constant 0 : index
    %4 = vector.load %arg3[%c0_3, %c0_4] : memref<1x512xf32, #tpu.memory_space<vmem>>, vector<1x512xf32>
    %5 = vector.broadcast %4 : vector<1x512xf32> to vector<8x512xf32>
    %6 = arith.addf %3, %5 : vector<8x512xf32>
    %cst_5 = arith.constant 0.000000e+00 : f32
    %7 = vector.broadcast %cst_5 : f32 to vector<8x512xf32>
    %8 = arith.maximumf %6, %7 : vector<8x512xf32>
    %c0_6 = arith.constant 0 : index
    %c0_7 = arith.constant 0 : index
    %9 = vector.load %arg4[%c0_6, %c0_7] : memref<512x384xf32, #tpu.memory_space<vmem>>, vector<512x384xf32>
    %cst_8 = arith.constant dense<0.000000e+00> : vector<8x384xf32>
    %10 = tpu.matmul %8, %9, %cst_8 {dimension_numbers = #tpu.dot_dimension_numbers<[1], [0], [0], [1], [0, 0, 1, 1], [], []>} : vector<8x512xf32>, vector<512x384xf32>, vector<8x384xf32> -> vector<8x384xf32>
    %c0_9 = arith.constant 0 : index
    %c0_10 = arith.constant 0 : index
    %11 = vector.load %arg5[%c0_9, %c0_10] : memref<1x384xf32, #tpu.memory_space<vmem>>, vector<1x384xf32>
    %12 = vector.broadcast %1 : vector<8x1xf32> to vector<8x384xf32>
    %13 = vector.broadcast %11 : vector<1x384xf32> to vector<8x384xf32>
    %14 = arith.mulf %12, %13 : vector<8x384xf32>
    %15 = arith.addf %10, %14 : vector<8x384xf32>
    %c0_11 = arith.constant 0 : index
    %c0_12 = arith.constant 0 : index
    %16 = vector.load %arg6[%c0_11, %c0_12] : memref<1x384xf32, #tpu.memory_space<vmem>>, vector<1x384xf32>
    %17 = vector.broadcast %16 : vector<1x384xf32> to vector<8x384xf32>
    %18 = arith.addf %15, %17 : vector<8x384xf32>
    %cst_13 = arith.constant 0.000000e+00 : f32
    %19 = vector.broadcast %cst_13 : f32 to vector<8x384xf32>
    %20 = arith.maximumf %18, %19 : vector<8x384xf32>
    %c0_14 = arith.constant 0 : index
    %c0_15 = arith.constant 0 : index
    %21 = vector.load %arg7[%c0_14, %c0_15] : memref<1x384xf32, #tpu.memory_space<vmem>>, vector<1x384xf32>
    %22 = vector.broadcast %21 : vector<1x384xf32> to vector<8x384xf32>
    %23 = arith.mulf %20, %22 : vector<8x384xf32>
    %cst_16 = arith.constant dense<0.000000e+00> : vector<8xf32>
    %24 = vector.multi_reduction <add>, %23, %cst_16 [1] : vector<8x384xf32> to vector<8xf32>
    %25 = vector.shape_cast %24 : vector<8xf32> to vector<1x8xf32>
    %c0_17 = arith.constant 0 : index
    %c0_18 = arith.constant 0 : index
    %26 = vector.load %arg8[%c0_17, %c0_18] : memref<1x1xf32, #tpu.memory_space<vmem>>, vector<1x1xf32>
    %27 = vector.broadcast %26 : vector<1x1xf32> to vector<1x8xf32>
    %28 = arith.addf %25, %27 : vector<1x8xf32>
    %c0_19 = arith.constant 0 : index
    %c0_20 = arith.constant 0 : index
    %29 = vector.load %arg9[%c0_19, %c0_20] : memref<1x8xf32, #tpu.memory_space<vmem>>, vector<1x8xf32>
    tpu.vector_store %arg9[%c0_19, %c0_20], %28 {strides = array<i32>} : memref<1x8xf32, #tpu.memory_space<vmem>>, vector<1x8xf32>,
    return
  }
  func.func @transform_0(%arg0: i32) -> (i32, i32) {
    %c0_i32 = arith.constant 0 : i32
    %c0_i32_0 = arith.constant 0 : i32
    return %arg0, %c0_i32 : i32, i32
  }
  func.func @transform_1(%arg0: i32) -> (i32, i32) {
    %c0_i32 = arith.constant 0 : i32
    %c0_i32_0 = arith.constant 0 : i32
    %c0_i32_1 = arith.constant 0 : i32
    return %c0_i32, %c0_i32_0 : i32, i32
  }
  func.func @transform_2(%arg0: i32) -> (i32, i32) {
    %c0_i32 = arith.constant 0 : i32
    %c0_i32_0 = arith.constant 0 : i32
    %c0_i32_1 = arith.constant 0 : i32
    return %c0_i32, %c0_i32_0 : i32, i32
  }
  func.func @transform_3(%arg0: i32) -> (i32, i32) {
    %c0_i32 = arith.constant 0 : i32
    %c0_i32_0 = arith.constant 0 : i32
    %c0_i32_1 = arith.constant 0 : i32
    return %c0_i32, %c0_i32_0 : i32, i32
  }
  func.func @transform_4(%arg0: i32) -> (i32, i32) {
    %c0_i32 = arith.constant 0 : i32
    %c0_i32_0 = arith.constant 0 : i32
    %c0_i32_1 = arith.constant 0 : i32
    return %c0_i32, %c0_i32_0 : i32, i32
  }
  func.func @transform_5(%arg0: i32) -> (i32, i32) {
    %c0_i32 = arith.constant 0 : i32
    %c0_i32_0 = arith.constant 0 : i32
    %c0_i32_1 = arith.constant 0 : i32
    return %c0_i32, %c0_i32_0 : i32, i32
  }
  func.func @transform_6(%arg0: i32) -> (i32, i32) {
    %c0_i32 = arith.constant 0 : i32
    %c0_i32_0 = arith.constant 0 : i32
    %c0_i32_1 = arith.constant 0 : i32
    return %c0_i32, %c0_i32_0 : i32, i32
  }
  func.func @transform_7(%arg0: i32) -> (i32, i32) {
    %c0_i32 = arith.constant 0 : i32
    %c0_i32_0 = arith.constant 0 : i32
    %c0_i32_1 = arith.constant 0 : i32
    return %c0_i32, %c0_i32_0 : i32, i32
  }
  func.func @transform_8(%arg0: i32) -> (i32, i32) {
    %c0_i32 = arith.constant 0 : i32
    %c0_i32_0 = arith.constant 0 : i32
    return %c0_i32, %arg0 : i32, i32
  }
}

</mosaic_0001>

<bundles_post_ra>
// kernel: tpu_custom_call.1
= control target key start
LH: loop header
LB: loop body
LE: loop exit
PB: predicated region body
PF: predicated region fallthrough
CT: control target
= control target key end

     0   :  { %s1409_s0 = inlined_call_operand.hbm [shape: f32[8,17], index: 0, kind: input, shape index: {}]   ;;  %s1410_s1 = inlined_call_operand.hbm [shape: f32[17,512], index: 1, kind: input, shape index: {}]   ;;  %s1411_s2 = inlined_call_operand.vmem [shape: f32[1,512], index: 2, kind: input, shape index: {}]   ;;  %s1412_s3 = inlined_call_operand.hbm [shape: f32[512,384], index: 3, kind: input, shape index: {}]   ;;  %s1413_s4 = inlined_call_operand.vmem [shape: f32[1,384], index: 4, kind: input, shape index: {}]   ;;  %s1414_s5 = inlined_call_operand.vmem [shape: f32[1,384], index: 5, kind: input, shape index: {}]   ;;  %s1415_s6 = inlined_call_operand.vmem [shape: f32[1,384], index: 6, kind: input, shape index: {}]   ;;  %s1416_s7 = inlined_call_operand.<no memory space> [shape: f32[1,1], index: 7, kind: input, shape index: {}]   ;;  %s1417_s8 = inlined_call_operand.hbm [shape: f32[1,8], index: 8, kind: output, shape index: {}]  }
   0x1   :  { %v13_v0 = vstv %s1416_s7 }
   0x2   :  { %14 = vst [vmem:[#allocation2] sm:$0x1] %v13_v0 }
   0x3   :  { %15 = vsyncpa [#allocation4], 0 }
   0x4   :  { %16 = vsyncpa [#allocation7], 0 }
   0x5   :  { %17 = vsyncpa [#allocation5], 0  ;;  %s1239_s29 = smov [#allocation6]   ;;  %s1145_s11 = scalar_lea.hbm %s1410_s1, 1536 }
   0x6   :  { %s33_s30 = sshll.u32 %s1239_s29, 4  ;;  %p1146_p0 = scmp.ne.s32.totalorder %s1410_s1, %s1145_s11  ;;  %s34_s30 = int_to_ptr.vmem [resolvable:$true] %s33_s30 }
   0x7   :  { %p1149_p1 = scmp.lt.u32.totalorder %s1145_s11, %s1410_s1 }
   0x9   :  { %p1151_p2 = pnand %p1149_p1, %p1146_p0 }
   0xb   :  { %1154 = shalt.err (!%p1151_p2)
}
   0xc   :  { %s1155_s7 = scalar_lea.vmem %s34_s30, 1536  ;;  %p1160_p4 = scmp.lt.s32.totalorder %s34_s30, %s34_s30 }
   0xd   :  { %p1156_p3 = scmp.ne.s32.totalorder %s34_s30, %s1155_s7  ;;  %p1161_p5 = scmp.lt.s32.totalorder %s1155_s7, %s1155_s7 }
   0xf   :  { %p1162_p6 = por %p1161_p5, %p1160_p4 }
  0x11   :  { %p1163_p7 = pnand %p1162_p6, %p1156_p3 }
  0x13   :  { %1166 = shalt.err (!%p1163_p7)
}
  0x14   :  { %s1240_s16 = smov 512   ;;  %s1241_s17 = smov 32  }
  0x15   :  { %39 = dma.hbm_to_vmem [thread:$0]  %s1410_s1, 1536, %s34_s30, [#allocation7], %s1240_s16, %s1240_s16, %s1241_s17  }
  0x16   :  { %s1242_s20 = smov [#allocation3]   ;;  %s1243_s22 = smov [#allocation8]  }
  0x17   :  { %s24_s21 = sshll.u32 %s1242_s20, 4  ;;  %s47_s23 = sshll.u32 %s1243_s22, 4  ;;  %s25_s21 = int_to_ptr.vmem [resolvable:$true] %s24_s21  ;;  %s48_s23 = int_to_ptr.vmem [resolvable:$true] %s47_s23 }
  0x18   :  { %s1167_s26 = scalar_lea.hbm %s1409_s0, 128 }
  0x19   :  { %p1168_p8 = scmp.ne.s32.totalorder %s1409_s0, %s1167_s26  ;;  %p1171_p9 = scmp.lt.u32.totalorder %s1167_s26, %s1409_s0 }
  0x1b   :  { %p1173_p10 = pnand %p1171_p9, %p1168_p8 }
  0x1d   :  { %1176 = shalt.err (!%p1173_p10)
}
  0x1e   :  { %s1177_s1 = scalar_lea.vmem %s25_s21, 128  ;;  %p1182_p12 = scmp.lt.s32.totalorder %s25_s21, %s25_s21 }
  0x1f   :  { %p1178_p11 = scmp.ne.s32.totalorder %s25_s21, %s1177_s1  ;;  %p1183_p13 = scmp.lt.s32.totalorder %s1177_s1, %s1177_s1 }
  0x21   :  { %p1184_p0 = por %p1183_p13, %p1182_p12 }
  0x23   :  { %p1185_p1 = pnand %p1184_p0, %p1178_p11 }
  0x25   :  { %1188 = shalt.err (!%p1185_p1)
}
  0x26   :  { %27 = dma.hbm_to_vmem [thread:$0]  %s1409_s0, 128, %s25_s21, [#allocation4]  }
  0x27   :  { %s1189_s13 = scalar_lea.hbm %s1412_s3, 24576 }
  0x28   :  { %p1190_p2 = scmp.ne.s32.totalorder %s1412_s3, %s1189_s13  ;;  %p1193_p3 = scmp.lt.u32.totalorder %s1189_s13, %s1412_s3 }
  0x2a   :  { %p1195_p4 = pnand %p1193_p3, %p1190_p2 }
  0x2c   :  { %1198 = shalt.err (!%p1195_p4)
}
  0x2d   :  { %s1199_s17 = scalar_lea.vmem %s48_s23, 24576  ;;  %p1204_p6 = scmp.lt.s32.totalorder %s48_s23, %s48_s23 }
  0x2e   :  { %p1200_p5 = scmp.ne.s32.totalorder %s48_s23, %s1199_s17  ;;  %p1205_p7 = scmp.lt.s32.totalorder %s1199_s17, %s1199_s17 }
  0x30   :  { %p1206_p8 = por %p1205_p7, %p1204_p6 }
  0x32   :  { %p1207_p9 = pnand %p1206_p8, %p1200_p5 }
  0x34   :  { %1210 = shalt.err (!%p1207_p9)
}
  0x35   :  { %s1244_s0 = smov 384   ;;  %s1245_s18 = smov 24  }
  0x36   :  { %53 = dma.hbm_to_vmem [thread:$0]  %s1412_s3, 24576, %s48_s23, [#allocation7], %s1244_s0, %s1244_s0, %s1245_s18  }
  0x37   :  { %1233 = dma.done.wait [#allocation4], 128  }
  0x38   :  { %1234 = vsyncadd [#allocation4], 4294967168 }
  0x39   :  { %1235 = dma.done.wait [#allocation7], 26112  }
  0x3a   :  { %1236 = vsyncadd [#allocation7], 4294941184  ;;  %v1246_v1 = vmov 0.0   ;;  %v73_v2 = vld [vmem:[#allocation6 + $0x8] sm:$0xff]  ;;  %v72_v4 = vld [vmem:[#allocation6] sm:$0xff]  ;;  %vm110_vm0 = vcmask 1040384  }
  0x3b   :  { %187 = vmatprep.mubr.f32.mxu1 %v1246_v1  ;;  %v77_v3 = vld [vmem:[#allocation6 + $0x28] sm:$0xff]  ;;  %v76_v6 = vld [vmem:[#allocation6 + $0x20] sm:$0xff]  ;;  %v75_v9 = vld [vmem:[#allocation6 + $0x18] sm:$0xff]  ;;  %vm106_vm1 = vcmask 138240   ;;  %vm833_vm2 = vcmask 57344  }
  0x3c   :  { %v927_v5 = vpack.c.bf16 %v77_v3, %v73_v2  ;;  %v929_v7 = vpack.c.bf16 %v76_v6, %v72_v4  ;;  %v81_v8 = vld [vmem:[#allocation6 + $0x48] sm:$0x1]  ;;  %v79_v10 = vld [vmem:[#allocation6 + $0x38] sm:$0xff]  ;;  %v80_v11 = vld [vmem:[#allocation6 + $0x40] sm:$0x1] }
  0x3d   :  { %v74_v12 = vld [vmem:[#allocation6 + $0x10] sm:$0xff]  ;;  %v1334_v14 = vld [vmem:[#allocation3] sm:$0xff]  ;;  %v270_v15 = vld [vmem:[#allocation8 + $0x8] sm:$0xff]  ;;  %v931_v17 = vpack.c.bf16 %v79_v10, %v75_v9 }
  0x3e   :  { %928 = vmatprep.subr.bf16.mxu1 %v927_v5  ;;  %v78_v13 = vld [vmem:[#allocation6 + $0x30] sm:$0xff]  ;;  %v273_v16 = vld [vmem:[#allocation8 + $0x20] sm:$0xff]  ;;  %v272_v20 = vld [vmem:[#allocation8 + $0x18] sm:$0xff] }
  0x3f   :  { %930 = vmatpush1.bf16.msra.mxu1 %v929_v7  ;;  %v935_v18 = vpack.c.bf16 %v273_v16, %v270_v15  ;;  %v269_v19 = vld [vmem:[#allocation8] sm:$0xff]  ;;  %v276_v21 = vld [vmem:[#allocation8 + $0x38] sm:$0xff]  ;;  %v933_v22 = vpack.c.bf16 %v78_v13, %v74_v12  ;;  %v279_v24 = vld [vmem:[#allocation8 + $0x50] sm:$0xff] }
  0x40   :  { %851 = vmatprep.subr.msk.mxu1 %vm110_vm0, %v81_v8  ;;  %v937_v23 = vpack.c.bf16 %v272_v20, %v269_v19  ;;  %v275_v25 = vld [vmem:[#allocation8 + $0x30] sm:$0xff]  ;;  %v278_v26 = vld [vmem:[#allocation8 + $0x48] sm:$0xff]  ;;  %v939_v27 = vpack.c.bf16 %v279_v24, %v276_v21  ;;  %v285_v29 = vld [vmem:[#allocation8 + $0x80] sm:$0xff] }
  0x41   :  { %936 = vmatprep.subr.bf16.mxu0 %v935_v18  ;;  %v282_v28 = vld [vmem:[#allocation8 + $0x68] sm:$0xff]  ;;  %v83_v30 = vld [vmem:[#allocation6 + $0x58] sm:$0x1]  ;;  %v941_v31 = vpack.c.bf16 %v278_v26, %v275_v25  ;;  %v281_v33 = vld [vmem:[#allocation8 + $0x60] sm:$0xff] }
  0x42   :  { %938 = vmatpush1.bf16.msra.mxu0 %v937_v23  ;;  %v943_v32 = vpack.c.bf16 %v285_v29, %v282_v28  ;;  %v284_v34 = vld [vmem:[#allocation8 + $0x78] sm:$0xff]  ;;  %v291_v36 = vld [vmem:[#allocation8 + $0xb0] sm:$0xff]  ;;  %v290_v41 = vld [vmem:[#allocation8 + $0xa8] sm:$0xff] }
  0x43   :  { %852 = vmatpush1.msk.msra.mxu1 %vm110_vm0, %v80_v11  ;;  %v288_v35 = vld [vmem:[#allocation8 + $0x98] sm:$0xff]  ;;  %v82_v37 = vld [vmem:[#allocation6 + $0x50] sm:$0x1]  ;;  %940 = vmatprep.subr.bf16.mxu0 %v939_v27  ;;  %v945_v38 = vpack.c.bf16 %v284_v34, %v281_v33  ;;  %v294_v42 = vld [vmem:[#allocation8 + $0xc8] sm:$0xff] }
  0x44   :  { %853 = vmatmul.mubr.msk.f32.vlgmr.msra.gmra.mrb[0].mxu1 %vm106_vm1, %v1334_v14  ;;  %932 = vmatprep.subr.bf16.mxu1 %v931_v17  ;;  %v947_v39 = vpack.c.bf16 %v291_v36, %v288_v35  ;;  %v287_v40 = vld [vmem:[#allocation8 + $0x90] sm:$0xff]  ;;  %v297_v43 = vld [vmem:[#allocation8 + $0xe0] sm:$0xff]  ;;  %v296_v47 = vld [vmem:[#allocation8 + $0xd8] sm:$0xff] }
  0x45   :  { %934 = vmatpush1.bf16.msra.mxu1 %v933_v22  ;;  %258 = vmatprep.mubr.f32.mxu1 %v1246_v1  ;;  %v319_v44 = vld [vmem:[#allocation8 + $0x190] sm:$0xff]  ;;  %v949_v45 = vpack.c.bf16 %v290_v41, %v287_v40  ;;  %v293_v46 = vld [vmem:[#allocation8 + $0xc0] sm:$0xff]  ;;  %v322_v48 = vld [vmem:[#allocation8 + $0x1a8] sm:$0xff]  ;;  %v951_v49 = vpack.c.bf16 %v297_v43, %v294_v42 }
  0x46   :  { %854 = vmatprep.subr.msk.mxu1 %vm110_vm0, %v83_v30  ;;  %942 = vmatpush1.bf16.msra.mxu0 %v941_v31  ;;  %v300_v50 = vld [vmem:[#allocation8 + $0xf8] sm:$0xff]  ;;  %v1063_v51 = vpack.c.bf16 %v322_v48, %v319_v44  ;;  %v271_v52 = vld [vmem:[#allocation8 + $0x10] sm:$0xff]  ;;  %v274_v53 = vld [vmem:[#allocation8 + $0x28] sm:$0xff]  ;;  %v953_v60 = vpack.c.bf16 %v296_v47, %v293_v46 }
  0x47   :  { %944 = vmatprep.subr.bf16.mxu0 %v943_v32  ;;  %v303_v54 = vld [vmem:[#allocation8 + $0x110] sm:$0xff]  ;;  %v1065_v55 = vpack.c.bf16 %v274_v53, %v271_v52  ;;  %v325_v56 = vld [vmem:[#allocation8 + $0x1c0] sm:$0xff]  ;;  %v328_v57 = vld [vmem:[#allocation8 + $0x1d8] sm:$0xff] }
  0x48   :  { %v1067_v58 = vpack.c.bf16 %v328_v57, %v325_v56  ;;  %v277_v59 = vld [vmem:[#allocation8 + $0x40] sm:$0xff]  ;;  %v299_v61 = vld [vmem:[#allocation8 + $0xf0] sm:$0xff]  ;;  %v302_v62 = vld [vmem:[#allocation8 + $0x108] sm:$0xff]  ;;  %v955_v0 = vpack.c.bf16 %v303_v54, %v300_v50 }
  0x49   :  { %855 = vmatpush1.msk.msra.mxu1 %vm110_vm0, %v82_v37  ;;  %v280_v63 = vld [vmem:[#allocation8 + $0x58] sm:$0xff]  ;;  %v306_v1 = vld [vmem:[#allocation8 + $0x128] sm:$0xff]  ;;  %v331_v3 = vld [vmem:[#allocation8 + $0x1f0] sm:$0xff]  ;;  %v957_v10 = vpack.c.bf16 %v302_v62, %v299_v61 }
  0x4a   :  { %856 = vmatmul.mubr.msk.f32.vlgmr.msra.gmra.mrb[2].mxu1 %vm106_vm1, %v1334_v14  ;;  %946 = vmatpush1.bf16.msra.mxu0 %v945_v38  ;;  %v1069_v2 = vpack.c.bf16 %v280_v63, %v277_v59  ;;  %v334_v4 = vld [vmem:[#allocation8 + $0x208] sm:$0xff]  ;;  %v309_v5 = vld [vmem:[#allocation8 + $0x140] sm:$0xff]  ;;  %v283_v7 = vld [vmem:[#allocation8 + $0x70] sm:$0xff] }
  0x4b   :  { %948 = vmatprep.subr.bf16.mxu0 %v947_v39  ;;  %1064 = vmatprep.subr.bf16.mxu1 %v1063_v51  ;;  %v1071_v6 = vpack.c.bf16 %v334_v4, %v331_v3  ;;  %v286_v8 = vld [vmem:[#allocation8 + $0x88] sm:$0xff]  ;;  %v337_v9 = vld [vmem:[#allocation8 + $0x220] sm:$0xff]  ;;  %v308_v12 = vld [vmem:[#allocation8 + $0x138] sm:$0xff]  ;;  %v959_v16 = vpack.c.bf16 %v309_v5, %v306_v1 }
  0x4c   :  { %1066 = vmatpush3.bf16.msra.mxu1 %v1065_v55  ;;  %v305_v11 = vld [vmem:[#allocation8 + $0x120] sm:$0xff]  ;;  %v1073_v13 = vpack.c.bf16 %v286_v8, %v283_v7  ;;  %v340_v15 = vld [vmem:[#allocation8 + $0x238] sm:$0xff]  ;;  %v315_v21 = vld [vmem:[#allocation8 + $0x170] sm:$0xff] }
  0x4d   :  { %1068 = vmatprep.subr.bf16.mxu1 %v1067_v58  ;;  %v312_v17 = vld [vmem:[#allocation8 + $0x158] sm:$0xff]  ;;  %v1075_v18 = vpack.c.bf16 %v340_v15, %v337_v9  ;;  %v289_v19 = vld [vmem:[#allocation8 + $0xa0] sm:$0xff]  ;;  %v343_v22 = vld [vmem:[#allocation8 + $0x250] sm:$0xff]  ;;  %v961_v24 = vpack.c.bf16 %v308_v12, %v305_v11 }
  0x4e   :  { %950 = vmatpush1.bf16.msra.mxu0 %v949_v45  ;;  %v292_v20 = vld [vmem:[#allocation8 + $0xb8] sm:$0xff]  ;;  %v346_v23 = vld [vmem:[#allocation8 + $0x268] sm:$0xff]  ;;  %v311_v25 = vld [vmem:[#allocation8 + $0x150] sm:$0xff]  ;;  %v963_v28 = vpack.c.bf16 %v315_v21, %v312_v17 }
  0x4f   :  { %952 = vmatprep.subr.bf16.mxu0 %v951_v49  ;;  %v314_v26 = vld [vmem:[#allocation8 + $0x168] sm:$0xff]  ;;  %v1077_v27 = vpack.c.bf16 %v292_v20, %v289_v19  ;;  %v1079_v30 = vpack.c.bf16 %v346_v23, %v343_v22  ;;  %v295_v31 = vld [vmem:[#allocation8 + $0xd0] sm:$0xff]  ;;  %v321_v33 = vld [vmem:[#allocation8 + $0x1a0] sm:$0xff] }
  0x50   :  { %1070 = vmatpush3.bf16.msra.mxu1 %v1069_v2  ;;  %v318_v29 = vld [vmem:[#allocation8 + $0x188] sm:$0xff]  ;;  %v349_v34 = vld [vmem:[#allocation8 + $0x280] sm:$0xff]  ;;  %v352_v35 = vld [vmem:[#allocation8 + $0x298] sm:$0xff]  ;;  %v965_v36 = vpack.c.bf16 %v314_v26, %v311_v25 }
  0x51   :  { %1072 = vmatprep.subr.bf16.mxu1 %v1071_v6  ;;  %v298_v32 = vld [vmem:[#allocation8 + $0xe8] sm:$0xff]  ;;  %v317_v37 = vld [vmem:[#allocation8 + $0x180] sm:$0xff]  ;;  %v320_v38 = vld [vmem:[#allocation8 + $0x198] sm:$0xff]  ;;  %v967_v40 = vpack.c.bf16 %v321_v33, %v318_v29  ;;  %v1083_v42 = vpack.c.bf16 %v352_v35, %v349_v34 }
  0x52   :  { %954 = vmatpush1.bf16.msra.mxu0 %v953_v60  ;;  %v1081_v39 = vpack.c.bf16 %v298_v32, %v295_v31  ;;  %v324_v41 = vld [vmem:[#allocation8 + $0x1b8] sm:$0xff]  ;;  %v301_v43 = vld [vmem:[#allocation8 + $0x100] sm:$0xff]  ;;  %v327_v45 = vld [vmem:[#allocation8 + $0x1d0] sm:$0xff]  ;;  %v969_v48 = vpack.c.bf16 %v320_v38, %v317_v37 }
  0x53   :  { %956 = vmatprep.subr.bf16.mxu0 %v955_v0  ;;  %v304_v44 = vld [vmem:[#allocation8 + $0x118] sm:$0xff]  ;;  %v355_v46 = vld [vmem:[#allocation8 + $0x2b0] sm:$0xff]  ;;  %v358_v47 = vld [vmem:[#allocation8 + $0x2c8] sm:$0xff]  ;;  %v971_v51 = vpack.c.bf16 %v327_v45, %v324_v41 }
  0x54   :  { %1074 = vmatpush3.bf16.msra.mxu1 %v1073_v13  ;;  %v323_v49 = vld [vmem:[#allocation8 + $0x1b0] sm:$0xff]  ;;  %v1085_v50 = vpack.c.bf16 %v304_v44, %v301_v43  ;;  %v326_v52 = vld [vmem:[#allocation8 + $0x1c8] sm:$0xff]  ;;  %v1087_v53 = vpack.c.bf16 %v358_v47, %v355_v46  ;;  %v333_v57 = vld [vmem:[#allocation8 + $0x200] sm:$0xff]  ;;  %v1247_v43 = vmov 16   ;;  %v86_v44 = vlaneseq }
  0x55   :  { %1076 = vmatprep.subr.bf16.mxu1 %v1075_v18  ;;  %v307_v54 = vld [vmem:[#allocation8 + $0x130] sm:$0xff]  ;;  %v310_v55 = vld [vmem:[#allocation8 + $0x148] sm:$0xff]  ;;  %v973_v58 = vpack.c.bf16 %v326_v52, %v323_v49  ;;  %v329_v61 = vld [vmem:[#allocation8 + $0x1e0] sm:$0xff]  ;;  %1142 = vset.pattern.permute.xlu0 %v1247_v43 }
  0x56   :  { %958 = vmatpush1.bf16.msra.mxu0 %v957_v10  ;;  %v330_v56 = vld [vmem:[#allocation8 + $0x1e8] sm:$0xff]  ;;  %v1089_v59 = vpack.c.bf16 %v310_v55, %v307_v54  ;;  %v332_v62 = vld [vmem:[#allocation8 + $0x1f8] sm:$0xff]  ;;  %v339_v0 = vld [vmem:[#allocation8 + $0x230] sm:$0xff]  ;;  %463 = vperm.xlu0 %1142, %v1334_v14   ;;  %v1346_v45 = vshrl.u32 %v86_v44, 7 }
  0x57   :  { %960 = vmatprep.subr.bf16.mxu0 %v959_v16  ;;  %v975_v60 = vpack.c.bf16 %v333_v57, %v330_v56  ;;  %v336_v63 = vld [vmem:[#allocation8 + $0x218] sm:$0xff]  ;;  %v977_v1 = vpack.c.bf16 %v332_v62, %v329_v61  ;;  %v335_v3 = vld [vmem:[#allocation8 + $0x210] sm:$0xff]  ;;  %v338_v4 = vld [vmem:[#allocation8 + $0x228] sm:$0xff] }
  0x58   :  { %1078 = vmatpush3.bf16.msra.mxu1 %v1077_v27  ;;  %v979_v2 = vpack.c.bf16 %v339_v0, %v336_v63  ;;  %v342_v5 = vld [vmem:[#allocation8 + $0x248] sm:$0xff]  ;;  %v345_v6 = vld [vmem:[#allocation8 + $0x260] sm:$0xff]  ;;  %v981_v7 = vpack.c.bf16 %v338_v4, %v335_v3  ;;  %v344_v10 = vld [vmem:[#allocation8 + $0x258] sm:$0xff]  ;;  %v1349_v46 = vsub.s32 0, %v1346_v45 }
  0x59   :  { %1080 = vmatprep.subr.bf16.mxu1 %v1079_v30  ;;  %v983_v8 = vpack.c.bf16 %v345_v6, %v342_v5  ;;  %v341_v9 = vld [vmem:[#allocation8 + $0x240] sm:$0xff]  ;;  %v348_v11 = vld [vmem:[#allocation8 + $0x278] sm:$0xff]  ;;  %v351_v12 = vld [vmem:[#allocation8 + $0x290] sm:$0xff] }
  0x5a   :  { %962 = vmatpush1.bf16.msra.mxu0 %v961_v24  ;;  %v985_v13 = vpack.c.bf16 %v344_v10, %v341_v9  ;;  %v987_v15 = vpack.c.bf16 %v351_v12, %v348_v11  ;;  %v347_v16 = vld [vmem:[#allocation8 + $0x270] sm:$0xff]  ;;  %v350_v17 = vld [vmem:[#allocation8 + $0x288] sm:$0xff]  ;;  %v357_v19 = vld [vmem:[#allocation8 + $0x2c0] sm:$0xff] }
  0x5b   :  { %964 = vmatprep.subr.bf16.mxu0 %v963_v28  ;;  %v354_v18 = vld [vmem:[#allocation8 + $0x2a8] sm:$0xff]  ;;  %v989_v20 = vpack.c.bf16 %v350_v17, %v347_v16  ;;  %v353_v22 = vld [vmem:[#allocation8 + $0x2a0] sm:$0xff]  ;;  %v356_v23 = vld [vmem:[#allocation8 + $0x2b8] sm:$0xff] }
  0x5c   :  { %1082 = vmatpush3.bf16.msra.mxu1 %v1081_v39  ;;  %v991_v21 = vpack.c.bf16 %v357_v19, %v354_v18  ;;  %v993_v24 = vpack.c.bf16 %v356_v23, %v353_v22  ;;  %v360_v25 = vld [vmem:[#allocation8 + $0x2d8] sm:$0xff]  ;;  %v363_v26 = vld [vmem:[#allocation8 + $0x2f0] sm:$0xff]  ;;  %v361_v27 = vld [vmem:[#allocation8 + $0x2e0] sm:$0xff] }
  0x5d   :  { %1084 = vmatprep.subr.bf16.mxu1 %v1083_v42  ;;  %v995_v28 = vpack.c.bf16 %v363_v26, %v360_v25  ;;  %v364_v29 = vld [vmem:[#allocation8 + $0x2f8] sm:$0xff]  ;;  %v359_v30 = vld [vmem:[#allocation8 + $0x2d0] sm:$0xff]  ;;  %v362_v31 = vld [vmem:[#allocation8 + $0x2e8] sm:$0xff] }
  0x5e   :  { %966 = vmatpush1.bf16.msra.mxu0 %v965_v36  ;;  %v1091_v32 = vpack.c.bf16 %v364_v29, %v361_v27  ;;  %v997_v33 = vpack.c.bf16 %v362_v31, %v359_v30  ;;  %v313_v34 = vld [vmem:[#allocation8 + $0x160] sm:$0xff]  ;;  %v316_v35 = vld [vmem:[#allocation8 + $0x178] sm:$0xff]  ;;  %v366_v37 = vld [vmem:[#allocation8 + $0x308] sm:$0xff] }
  0x5f   :  { %968 = vmatprep.subr.bf16.mxu0 %v967_v40  ;;  %v1093_v36 = vpack.c.bf16 %v316_v35, %v313_v34  ;;  %v369_v38 = vld [vmem:[#allocation8 + $0x320] sm:$0xff]  ;;  %v415_v39 = vld [vmem:[#allocation8 + $0x490] sm:$0xff]  ;;  %v418_v41 = vld [vmem:[#allocation8 + $0x4a8] sm:$0xff] }
  0x60   :  { %1086 = vmatpush3.bf16.msra.mxu1 %v1085_v50  ;;  %v999_v40 = vpack.c.bf16 %v369_v38, %v366_v37  ;;  %v1095_v42 = vpack.c.bf16 %v418_v41, %v415_v39  ;;  %v1354_v47 = vld [vmem:[%s1411_s2] sm:$0xf]  ;;  %v370_v57 = vld [vmem:[#allocation8 + $0x328] sm:$0xff]  ;;  %v421_v61 = vld [vmem:[#allocation8 + $0x4c0] sm:$0xff] }
  0x61   :  { %1088 = vmatprep.subr.bf16.mxu1 %v1087_v53  ;;  %v89_v49 = vrot.slane %v1354_v47, %v1349_v46  ;;  %v368_v52 = vld [vmem:[#allocation8 + $0x318] sm:$0xff]  ;;  %v100_v53 = vsub.s32 3, %v1346_v45  ;;  %v367_v56 = vld [vmem:[#allocation8 + $0x310] sm:$0xff]  ;;  %v374_v3 = vld [vmem:[#allocation8 + $0x348] sm:$0xff] }
  0x62   :  { %970 = vmatpush1.bf16.msra.mxu0 %v969_v48  ;;  %v1357_v48 = vsub.s32 1, %v1346_v45  ;;  %v424_v62 = vld [vmem:[#allocation8 + $0x4d8] sm:$0xff]  ;;  %v378_v10 = vld [vmem:[#allocation8 + $0x368] sm:$0xff]  ;;  %v381_v11 = vld [vmem:[#allocation8 + $0x380] sm:$0xff] }
  0x63   :  { %972 = vmatprep.subr.bf16.mxu0 %v971_v51  ;;  %v365_v51 = vld [vmem:[#allocation8 + $0x300] sm:$0xff]  ;;  %v101_v4 = vrot.slane %v1354_v47, %v100_v53  ;;  %v376_v9 = vld [vmem:[#allocation8 + $0x358] sm:$0xff]  ;;  %v427_v12 = vld [vmem:[#allocation8 + $0x4f0] sm:$0xff]  ;;  %v1007_v22 = vpack.c.bf16 %v381_v11, %v378_v10 }
  0x64   :  { %1090 = vmatpush3.bf16.msra.mxu1 %v1089_v59  ;;  %v93_v14 = vrot.slane %v1354_v47, %v1357_v48  ;;  %v1001_v0 = vpack.c.bf16 %v368_v52, %v365_v51  ;;  %v377_v19 = vld [vmem:[#allocation8 + $0x360] sm:$0xff]  ;;  %v382_v25 = vld [vmem:[#allocation8 + $0x388] sm:$0xff]  ;;  %v384_v26 = vld [vmem:[#allocation8 + $0x398] sm:$0xff] }
  0x65   :  { %1092 = vmatprep.subr.bf16.mxu1 %v1091_v32  ;;  %v387_v27 = vld [vmem:[#allocation8 + $0x3b0] sm:$0xff]  ;;  %v436_v29 = vld [vmem:[#allocation8 + $0x538] sm:$0xff]  ;;  %v386_v34 = vld [vmem:[#allocation8 + $0x3a8] sm:$0xff] }
  0x66   :  { %974 = vmatpush1.bf16.msra.mxu0 %v973_v58  ;;  %v372_v58 = vld [vmem:[#allocation8 + $0x338] sm:$0xff]  ;;  %v1011_v35 = vpack.c.bf16 %v387_v27, %v384_v26  ;;  %v385_v37 = vld [vmem:[#allocation8 + $0x3a0] sm:$0xff]  ;;  %v390_v39 = vld [vmem:[#allocation8 + $0x3c8] sm:$0xff] }
  0x67   :  { %976 = vmatprep.subr.bf16.mxu0 %v975_v60  ;;  %v375_v60 = vld [vmem:[#allocation8 + $0x350] sm:$0xff]  ;;  %v388_v38 = vld [vmem:[#allocation8 + $0x3b8] sm:$0xff]  ;;  %v401_v10 = vld [vmem:[#allocation8 + $0x420] sm:$0xff] }
  0x68   :  { %1094 = vmatpush3.bf16.msra.mxu1 %v1093_v36  ;;  %v1003_v6 = vpack.c.bf16 %v375_v60, %v372_v58  ;;  %v439_v41 = vld [vmem:[#allocation8 + $0x550] sm:$0xff]  ;;  %v448_v58 = vld [vmem:[#allocation8 + $0x598] sm:$0xff] }
  0x69   :  { %1096 = vmatprep.subr.bf16.mxu1 %v1095_v42  ;;  %v442_v42 = vld [vmem:[#allocation8 + $0x568] sm:$0xff]  ;;  %v391_v53 = vld [vmem:[#allocation8 + $0x3d0] sm:$0xff]  ;;  %v404_v11 = vld [vmem:[#allocation8 + $0x438] sm:$0xff] }
  0x6a   :  { %978 = vmatpush1.bf16.msra.mxu0 %v977_v1  ;;  %v1097_v1 = vpack.c.bf16 %v370_v57, %v367_v56  ;;  %v1111_v52 = vpack.c.bf16 %v442_v42, %v439_v41  ;;  %v399_v56 = vld [vmem:[#allocation8 + $0x410] sm:$0xff]  ;;  %v445_v57 = vld [vmem:[#allocation8 + $0x580] sm:$0xff] }
  0x6b   :  { %980 = vmatprep.subr.bf16.mxu0 %v979_v2  ;;  %v371_v2 = vld [vmem:[#allocation8 + $0x330] sm:$0xff] }
  0x6c   :  { %v1005_v17 = vpack.c.bf16 %v374_v3, %v371_v2  ;;  %v400_v2 = vld [vmem:[#allocation8 + $0x418] sm:$0xff]  ;;  %v402_v3 = vld [vmem:[#allocation8 + $0x428] sm:$0xff] }
  0x6e   :  { %982 = vmatpush1.bf16.msra.mxu0 %v981_v7  ;;  %v1099_v7 = vpack.c.bf16 %v424_v62, %v421_v61  ;;  %v395_v61 = vld [vmem:[#allocation8 + $0x3f0] sm:$0xff]  ;;  %v398_v62 = vld [vmem:[#allocation8 + $0x408] sm:$0xff] }
  0x6f   :  { %984 = vmatprep.subr.bf16.mxu0 %v983_v8  ;;  %v373_v8 = vld [vmem:[#allocation8 + $0x340] sm:$0xff] }
  0x70   :  { %v1101_v18 = vpack.c.bf16 %v376_v9, %v373_v8  ;;  %v1021_v8 = vpack.c.bf16 %v398_v62, %v395_v61  ;;  %v441_v61 = vld [vmem:[#allocation8 + $0x560] sm:$0xff] }
  0x72   :  { %986 = vmatpush1.bf16.msra.mxu0 %v985_v13  ;;  %v430_v13 = vld [vmem:[#allocation8 + $0x508] sm:$0xff] }
  0x73   :  { %988 = vmatprep.subr.bf16.mxu0 %v987_v15  ;;  %v1103_v23 = vpack.c.bf16 %v430_v13, %v427_v12 }
  0x76   :  { %990 = vmatpush1.bf16.msra.mxu0 %v989_v20  ;;  %v380_v20 = vld [vmem:[#allocation8 + $0x378] sm:$0xff] }
  0x77   :  { %992 = vmatprep.subr.bf16.mxu0 %v991_v21  ;;  %v1009_v31 = vpack.c.bf16 %v380_v20, %v377_v19  ;;  %v411_v19 = vld [vmem:[#allocation8 + $0x470] sm:$0xff]  ;;  %v457_v20 = vld [vmem:[#allocation8 + $0x5e0] sm:$0xff] }
  0x7a   :  { %994 = vmatpush1.bf16.msra.mxu0 %v993_v24  ;;  %v379_v24 = vld [vmem:[#allocation8 + $0x370] sm:$0xff] }
  0x7b   :  { %996 = vmatprep.subr.bf16.mxu0 %v995_v28  ;;  %v433_v28 = vld [vmem:[#allocation8 + $0x520] sm:$0xff]  ;;  %v1105_v32 = vpack.c.bf16 %v382_v25, %v379_v24  ;;  %v407_v25 = vld [vmem:[#allocation8 + $0x450] sm:$0xff] }
  0x7c   :  { %v1107_v36 = vpack.c.bf16 %v436_v29, %v433_v28  ;;  %v410_v28 = vld [vmem:[#allocation8 + $0x468] sm:$0xff]  ;;  %v409_v29 = vld [vmem:[#allocation8 + $0x460] sm:$0xff] }
  0x7e   :  { %998 = vmatpush1.bf16.msra.mxu0 %v997_v33  ;;  %v383_v33 = vld [vmem:[#allocation8 + $0x390] sm:$0xff] }
  0x7f   :  { %1000 = vmatprep.subr.bf16.mxu0 %v999_v40  ;;  %v393_v40 = vld [vmem:[#allocation8 + $0x3e0] sm:$0xff]  ;;  %v1013_v43 = vpack.c.bf16 %v386_v34, %v383_v33 }
  0x80   :  { %v1015_v51 = vpack.c.bf16 %v393_v40, %v390_v39  ;;  %v423_v39 = vld [vmem:[#allocation8 + $0x4d0] sm:$0xff] }
 0x117   :  { %v189_v50 = vpop.f32.mrb[0].mxu1 }
 0x118   :  { %v190_v54 = vadd.f32 %v189_v50, %v89_v49  ;;  %v191_v55 = vpop.f32.mrb[1].mxu1  ;;  %v1109_v49 = vpack.c.bf16 %v388_v38, %v385_v37  ;;  %v392_v50 = vld [vmem:[#allocation8 + $0x3d8] sm:$0xff] }
 0x119   :  { %v192_v59 = vadd.f32 %v191_v55, %v93_v14  ;;  %v389_v14 = vld [vmem:[#allocation8 + $0x3c0] sm:$0xff]  ;;  %v396_v55 = vld [vmem:[#allocation8 + $0x3f8] sm:$0xff] }
 0x11a   :  { %v265_v5 = vmax.f32 %v190_v54, 0.0  ;;  %v394_v54 = vld [vmem:[#allocation8 + $0x3e8] sm:$0xff]  ;;  %v416_v37 = vld [vmem:[#allocation8 + $0x498] sm:$0xff] }
 0x11b   :  { %v266_v63 = vmax.f32 %v192_v59, 0.0  ;;  %v1017_v59 = vpack.c.bf16 %v392_v50, %v389_v14  ;;  %v1113_v60 = vpack.c.bf16 %v394_v54, %v391_v53  ;;  %v420_v38 = vld [vmem:[#allocation8 + $0x4b8] sm:$0xff]  ;;  %v429_v14 = vld [vmem:[#allocation8 + $0x500] sm:$0xff] }
 0x11c   :  { %v1035_v42 = vpack.c.bf16 %v423_v39, %v420_v38  ;;  %v428_v53 = vld [vmem:[#allocation8 + $0x4f8] sm:$0xff] }
 0x11d   :  { %549 = vmatprep.mubr.f32.mxu0 %v266_v63  ;;  %691 = vmatprep.mubr.f32.mxu1 %v266_v63  ;;  %v1365_v15 = vpop.f32.mrb[2].mxu1  ;;  %v1019_v63 = vpack.c.bf16 %v399_v56, %v396_v55  ;;  %v432_v54 = vld [vmem:[#allocation8 + $0x518] sm:$0xff]  ;;  %v435_v55 = vld [vmem:[#allocation8 + $0x530] sm:$0xff] }
 0x11e   :  { %550 = vmatmul.mubr.f32.vlgmr.msra.gmra.mrb[0].mxu0 %v265_v5  ;;  %692 = vmatmul.mubr.f32.vlgmr.msra.gmra.mrb[4].mxu1 %v265_v5  ;;  %v262_v16 = vpop.f32.mrb[3].mxu1  ;;  %v451_v5 = vld [vmem:[#allocation8 + $0x5b0] sm:$0xff] }
 0x11f   :  { %1002 = vmatpush1.bf16.msra.mxu0 %v1001_v0  ;;  %1098 = vmatpush3.bf16.msra.mxu1 %v1097_v1  ;;  %v263_v21 = vadd.f32 %v262_v16, %v101_v4  ;;  %v1115_v0 = vpack.c.bf16 %v448_v58, %v445_v57  ;;  %v397_v1 = vld [vmem:[#allocation8 + $0x400] sm:$0xff]  ;;  %v403_v16 = vld [vmem:[#allocation8 + $0x430] sm:$0xff]  ;;  %v1043_v57 = vpack.c.bf16 %v435_v55, %v432_v54 }
 0x120   :  { %1004 = vmatprep.subr.bf16.mxu0 %v1003_v6  ;;  %1100 = vmatprep.subr.bf16.mxu1 %v1099_v7  ;;  %v405_v4 = vld [vmem:[#allocation8 + $0x440] sm:$0xff]  ;;  %v454_v6 = vld [vmem:[#allocation8 + $0x5c8] sm:$0xff]  ;;  %v1368_v7 = vsub.s32 2, %v1346_v45  ;;  %v1117_v9 = vpack.c.bf16 %v400_v2, %v397_v1  ;;  %v431_v58 = vld [vmem:[#allocation8 + $0x510] sm:$0xff] }
 0x121   :  { %v268_v30 = vmax.f32 %v263_v21, 0.0  ;;  %v1023_v12 = vpack.c.bf16 %v405_v4, %v402_v3  ;;  %v1119_v13 = vpack.c.bf16 %v454_v6, %v451_v5  ;;  %v460_v21 = vld [vmem:[#allocation8 + $0x5f8] sm:$0xff]  ;;  %v447_v3 = vld [vmem:[#allocation8 + $0x590] sm:$0xff] }
 0x122   :  { %v1123_v27 = vpack.c.bf16 %v460_v21, %v457_v20  ;;  %v440_v1 = vld [vmem:[#allocation8 + $0x558] sm:$0xff]  ;;  %v443_v6 = vld [vmem:[#allocation8 + $0x570] sm:$0xff] }
 0x123   :  { %1006 = vmatpush1.bf16.msra.mxu0 %v1005_v17  ;;  %1102 = vmatpush3.bf16.msra.mxu1 %v1101_v18  ;;  %v406_v17 = vld [vmem:[#allocation8 + $0x448] sm:$0xff]  ;;  %v408_v18 = vld [vmem:[#allocation8 + $0x458] sm:$0xff]  ;;  %v455_v21 = vld [vmem:[#allocation8 + $0x5d0] sm:$0xff] }
 0x124   :  { %1008 = vmatprep.subr.bf16.mxu0 %v1007_v22  ;;  %1104 = vmatprep.subr.bf16.mxu1 %v1103_v23  ;;  %v97_v22 = vrot.slane %v1354_v47, %v1368_v7  ;;  %v1025_v23 = vpack.c.bf16 %v404_v11, %v401_v10  ;;  %v1121_v24 = vpack.c.bf16 %v406_v17, %v403_v16  ;;  %v444_v2 = vld [vmem:[#allocation8 + $0x578] sm:$0xff]  ;;  %v453_v10 = vld [vmem:[#allocation8 + $0x5c0] sm:$0xff] }
 0x125   :  { %761 = vmatprep.mubr.f32.mxu1 %v268_v30  ;;  %620 = vmatprep.mubr.f32.mxu0 %v268_v30  ;;  %v1027_v26 = vpack.c.bf16 %v411_v19, %v408_v18  ;;  %v412_v30 = vld [vmem:[#allocation8 + $0x478] sm:$0xff]  ;;  %v1029_v47 = vpack.c.bf16 %v410_v28, %v407_v25  ;;  %v1051_v5 = vpack.c.bf16 %v447_v3, %v444_v2  ;;  %v459_v18 = vld [vmem:[#allocation8 + $0x5f0] sm:$0xff]  ;;  %v1248_v25 = vmov 0  }
 0x126   :  { %v1373_v33 = vadd.f32 %v1365_v15, %v97_v22  ;;  %v1125_v34 = vpack.c.bf16 %v412_v30, %v409_v29  ;;  %v419_v15 = vld [vmem:[#allocation8 + $0x4b0] sm:$0xff]  ;;  %v452_v16 = vld [vmem:[#allocation8 + $0x5b8] sm:$0xff]  ;;  %v458_v22 = vld [vmem:[#allocation8 + $0x5e8] sm:$0xff]  ;;  %1143 = vset.pattern.permute.xlu1 %v1248_v25  ;;  %1144 = vset.pattern.permute.xlu0 %v1248_v25 }
 0x127   :  { %1010 = vmatpush1.bf16.msra.mxu0 %v1009_v31  ;;  %1106 = vmatpush3.bf16.msra.mxu1 %v1105_v32  ;;  %v414_v31 = vld [vmem:[#allocation8 + $0x488] sm:$0xff]  ;;  %v417_v32 = vld [vmem:[#allocation8 + $0x4a0] sm:$0xff]  ;;  %v456_v17 = vld [vmem:[#allocation8 + $0x5d8] sm:$0xff] }
 0x128   :  { %1012 = vmatprep.subr.bf16.mxu0 %v1011_v35  ;;  %1108 = vmatprep.subr.bf16.mxu1 %v1107_v36  ;;  %v1031_v35 = vpack.c.bf16 %v417_v32, %v414_v31  ;;  %v413_v36 = vld [vmem:[#allocation8 + $0x480] sm:$0xff]  ;;  %v267_v40 = vmax.f32 %v1373_v33, 0.0  ;;  %v1059_v20 = vpack.c.bf16 %v459_v18, %v456_v17  ;;  %v461_v29 = vld [vmem:[%s1413_s4] sm:$0x7]  ;;  %v464_v31 = vpop.permute.xlu0 %463 }
 0x129   :  { %v1033_v41 = vpack.c.bf16 %v416_v37, %v413_v36  ;;  %v478_v30 = vrot.slane %v461_v29, %v1368_v7  ;;  %v470_v37 = vrot.slane %v461_v29, %v1349_v46  ;;  %v474_v38 = vrot.slane %v461_v29, %v1357_v48  ;;  %v767_v39 = vld [vmem:[%s1414_s5] sm:$0x7]  ;;  %s1249_s5 = smov [#allocation9]  }
 0x12b   :  { %1014 = vmatpush1.bf16.msra.mxu0 %v1013_v43  ;;  %1110 = vmatpush3.bf16.msra.mxu1 %v1109_v49  ;;  %v422_v43 = vld [vmem:[#allocation8 + $0x4c8] sm:$0xff]  ;;  %v484_v32 = vmul.f32 %v478_v30, %v464_v31 }
 0x12c   :  { %1016 = vmatprep.subr.bf16.mxu0 %v1015_v51  ;;  %1112 = vmatprep.subr.bf16.mxu1 %v1111_v52  ;;  %v426_v49 = vld [vmem:[#allocation8 + $0x4e8] sm:$0xff]  ;;  %v1037_v50 = vpack.c.bf16 %v422_v43, %v419_v15  ;;  %v425_v52 = vld [vmem:[#allocation8 + $0x4e0] sm:$0xff]  ;;  %v772_v15 = vrot.slane %v767_v39, %v1349_v46 }
 0x12d   :  { %v1039_v51 = vpack.c.bf16 %v429_v14, %v426_v49  ;;  %v1041_v56 = vpack.c.bf16 %v428_v53, %v425_v52  ;;  %v776_v49 = vrot.slane %v767_v39, %v1357_v48  ;;  %v790_v52 = vld [vmem:[%s1415_s6] sm:$0x7]  ;;  %s841_s6 = sshll.u32 %s1249_s5, 4  ;;  %s842_s6 = int_to_ptr.vmem [resolvable:$true] %s841_s6 }
 0x12e   :  { %v795_v55 = vrot.slane %v790_v52, %v1349_v46  ;;  %s1211_s26 = scalar_lea.vmem %s842_s6, 16  ;;  %s1215_s27 = scalar_lea.vmem %s842_s6, 32 }
 0x12f   :  { %1018 = vmatpush1.bf16.msra.mxu0 %v1017_v59  ;;  %1114 = vmatpush3.bf16.msra.mxu1 %v1113_v60  ;;  %v434_v59 = vld [vmem:[#allocation8 + $0x528] sm:$0xff]  ;;  %p1212_p10 = scmp.ne.s32.totalorder %s842_s6, %s1211_s26  ;;  %p1216_p11 = scmp.lt.s32.totalorder %s842_s6, %s842_s6 }
 0x130   :  { %1020 = vmatprep.subr.bf16.mxu0 %v1019_v63  ;;  %1116 = vmatprep.subr.bf16.mxu1 %v1115_v0  ;;  %v438_v60 = vld [vmem:[#allocation8 + $0x548] sm:$0xff]  ;;  %v1045_v62 = vpack.c.bf16 %v434_v59, %v431_v58  ;;  %v437_v0 = vld [vmem:[#allocation8 + $0x540] sm:$0xff]  ;;  %p1217_p12 = scmp.lt.s32.totalorder %s1215_s27, %s1211_s26 }
 0x131   :  { %v1047_v63 = vpack.c.bf16 %v441_v61, %v438_v60  ;;  %v1049_v4 = vpack.c.bf16 %v440_v1, %v437_v0  ;;  %v803_v61 = vrot.slane %v790_v52, %v1368_v7 }
 0x132   :  { %p1218_p13 = por %p1217_p12, %p1216_p11 }
 0x133   :  { %1022 = vmatpush1.bf16.msra.mxu0 %v1021_v8  ;;  %1118 = vmatpush3.bf16.msra.mxu1 %v1117_v9  ;;  %v446_v8 = vld [vmem:[#allocation8 + $0x588] sm:$0xff] }
 0x134   :  { %1024 = vmatprep.subr.bf16.mxu0 %v1023_v12  ;;  %1120 = vmatprep.subr.bf16.mxu1 %v1119_v13  ;;  %v450_v9 = vld [vmem:[#allocation8 + $0x5a8] sm:$0xff]  ;;  %v1053_v11 = vpack.c.bf16 %v446_v8, %v443_v6  ;;  %v449_v13 = vld [vmem:[#allocation8 + $0x5a0] sm:$0xff]  ;;  %p1219_p0 = pnand %p1218_p13, %p1212_p10 }
 0x135   :  { %v1055_v12 = vpack.c.bf16 %v453_v10, %v450_v9  ;;  %v1057_v19 = vpack.c.bf16 %v452_v16, %v449_v13 }
 0x137   :  { %1026 = vmatpush1.bf16.msra.mxu0 %v1025_v23  ;;  %1122 = vmatpush3.bf16.msra.mxu1 %v1121_v24  ;;  %v1061_v23 = vpack.c.bf16 %v458_v22, %v455_v21  ;;  %v814_v24 = vld [vmem:[#allocation2] sm:$0x1] }
 0x138   :  { %1028 = vmatprep.subr.bf16.mxu0 %v1027_v26  ;;  %1124 = vmatprep.subr.bf16.mxu1 %v1123_v27 }
 0x139   :  { %817 = vperm.xlu1 %1143, %v814_v24  }
 0x13b   :  { %1030 = vmatpush1.bf16.msra.mxu0 %v1029_v47  ;;  %1126 = vmatpush3.bf16.msra.mxu1 %v1125_v34 }
 0x13c   :  { %1032 = vmatprep.subr.bf16.mxu0 %v1031_v35 }
 0x13e   :  { %762 = vmatmul.mubr.f32.vlgmr.msra.gmra.mrb[6].mxu1 %v267_v40 }
 0x13f   :  { %1034 = vmatpush1.bf16.msra.mxu0 %v1033_v41  ;;  %v780_v41 = vrot.slane %v767_v39, %v1368_v7 }
 0x140   :  { %1036 = vmatprep.subr.bf16.mxu0 %v1035_v42  ;;  %v483_v42 = vmul.f32 %v474_v38, %v464_v31 }
 0x143   :  { %1038 = vmatpush1.bf16.msra.mxu0 %v1037_v50 }
 0x144   :  { %1040 = vmatprep.subr.bf16.mxu0 %v1039_v51 }
 0x147   :  { %1042 = vmatpush1.bf16.msra.mxu0 %v1041_v56 }
 0x148   :  { %1044 = vmatprep.subr.bf16.mxu0 %v1043_v57  ;;  %v799_v57 = vrot.slane %v790_v52, %v1357_v48 }
 0x14b   :  { %1046 = vmatpush1.bf16.msra.mxu0 %v1045_v62 }
 0x14c   :  { %1048 = vmatprep.subr.bf16.mxu0 %v1047_v63 }
 0x14f   :  { %1050 = vmatpush1.bf16.msra.mxu0 %v1049_v4  ;;  %v827_v4 = vand.u32 127, %v86_v44 }
 0x150   :  { %1052 = vmatprep.subr.bf16.mxu0 %v1051_v5 }
 0x151   :  { %v830_v6 = vsub.s32 %v827_v4, %v1346_v45 }
 0x153   :  { %1054 = vmatpush1.bf16.msra.mxu0 %v1053_v11 }
 0x154   :  { %1056 = vmatprep.subr.bf16.mxu0 %v1055_v12 }
 0x157   :  { %1058 = vmatpush1.bf16.msra.mxu0 %v1057_v19 }
 0x158   :  { %1060 = vmatprep.subr.bf16.mxu0 %v1059_v20 }
 0x15b   :  { %1062 = vmatpush1.bf16.msra.mxu0 %v1061_v23 }
 0x15e   :  { %621 = vmatmul.mubr.f32.vlgmr.msra.gmra.mrb[0].mxu0 %v267_v40  ;;  %v482_v40 = vmul.f32 %v470_v37, %v464_v31 }
 0x1b8   :  { %v818_v3 = vpop.permute.xlu1 %817 }
 0x1b9   :  { %v823_v5 = vrot.slane %v818_v3, %v1349_v46 }
 0x1f1   :  { %v889_v26 = vpop.f32.mrb[4].mxu1 }
 0x1f2   :  { %v890_v27 = vpop.f32.mrb[5].mxu1 }
 0x1f3   :  { %v891_v28 = vadd.f32 %v890_v27, %v889_v26 }
 0x1f5   :  { %v694_v34 = vadd.f32 %v891_v28, %v484_v32 }
 0x211   :  { %v924_v33 = vpop.f32.mrb[6].mxu1 }
 0x212   :  { %v925_v47 = vpop.f32.mrb[7].mxu1 }
 0x213   :  { %v926_v35 = vadd.f32 %v925_v47, %v924_v33 }
 0x215   :  { %v764_v36 = vadd.f32 %v926_v35, %v694_v34 }
 0x217   :  { %v786_v51 = vadd.f32 %v780_v41, %v764_v36 }
 0x219   :  { %v789_v59 = vmax.f32 %v786_v51, 0.0 }
 0x21b   :  { %v809_v0 = vmul.f32 %v803_v61, %v789_v59 }
 0x231   :  { %v622_v43 = vpop.f32.mrb[0].mxu0 }
 0x232   :  { %v1127_v14 = vadd.f32 %v622_v43, %v482_v40  ;;  %v624_v50 = vpop.f32.mrb[1].mxu0 }
 0x233   :  { %v1128_v53 = vadd.f32 %v624_v50, %v483_v42 }
 0x234   :  { %v784_v54 = vadd.f32 %v1127_v14, %v772_v15 }
 0x235   :  { %v785_v56 = vadd.f32 %v1128_v53, %v776_v49 }
 0x236   :  { %v787_v58 = vmax.f32 %v784_v54, 0.0 }
 0x237   :  { %v788_v60 = vmax.f32 %v785_v56, 0.0 }
 0x238   :  { %v807_v62 = vmul.f32 %v795_v55, %v787_v58 }
 0x239   :  { %v808_v63 = vmul.f32 %v799_v57, %v788_v60 }
 0x23b   :  { %v810_v1 = vadd.f32 %v808_v63, %v807_v62 }
 0x23d   :  { %v811_v2 = vadd.f32 %v810_v1, %v809_v0 }
 0x23f   :  { %812 = vadd.xlane.f32.xlu0 %v811_v2 }
 0x2cc   :  { %v813_v8 = vpop.xlane.xlu0 %812 }
 0x2cd   :  { %v824_v48 = vadd.f32 %v823_v5, %v813_v8 }
 0x2cf   :  { %v831_v9 = vrot.slane %v824_v48, %v830_v6 }
 0x2d1   :  { %834 = vst.msk [vmem:[#allocation9] sm:$0x1] %vm833_vm2, %v831_v9 }
 0x2d2   :  { %1222 = shalt.err (!%p1219_p0)
}
 0x2d3   :  { %s1223_s9 = scalar_lea.hbm %s1417_s8, 16 }
 0x2d4   :  { %p1224_p1 = scmp.ne.s32.totalorder %s1417_s8, %s1223_s9  ;;  %p1227_p2 = scmp.lt.u32.totalorder %s1223_s9, %s1417_s8 }
 0x2d6   :  { %p1229_p3 = pnand %p1227_p2, %p1224_p1 }
 0x2d8   :  { %1232 = shalt.err (!%p1229_p3)
}
 0x2d9   :  { %844 = dma.vmem_to_hbm [thread:$0]  %s842_s6, 16, %s1417_s8, [#allocation5]  }
 0x2da   :  { %1237 = dma.done.wait [#allocation5], 16  }
 0x2db   :  { %1238 = vsyncadd [#allocation5], 4294967280 }
 0x2dc   :  { %848 = vsyncpa [#allocation4], 1 }
 0x2dd   :  { %849 = vsyncpa [#allocation7], 1 }
 0x2de   :  { %850 = vsyncpa [#allocation5], 1 }

</bundles_post_ra>
